<compile_context>
chip_gen: v5e
topology: v5e:2x2
jax: 0.10.0
libtpu: 0.0.40
codegen_flags: <defaults>
</compile_context>

<pallas_src>
import math

import jax
import jax.numpy as jnp
from jax.experimental import pallas as pl
from jax.experimental.pallas import tpu as pltpu


def _mlp_kernel(c_ref, out_ref):
    """Linear(2,2) -> ReLU -> Linear(2,1) with constant weights, VPU only.

    c_ref:   (n, 2) f32 VMEM tile; row i holds [a_i, b_i].
    out_ref: (n, 1) f32 VMEM tile; row i holds the MLP output.
    """
    c = c_ref[...]                                   # (n, 2)
    a = c[:, 0:1]                                    # (n, 1)
    b = c[:, 1:2]                                    # (n, 1)
    # Hidden layer (bias = 0): rows of W1 = [[2,3],[1,1]] baked in as constants.
    h0 = jnp.maximum(2.0 * a + 3.0 * b, 0.0)         # relu(2a + 3b)
    h1 = jnp.maximum(a + b, 0.0)                     # relu( a +  b)
    # Output layer (bias = 0): W2 = [1, -1].
    out_ref[...] = h0 - h1                           # (n, 1), no broadcast store


def _pallas_mlp(coeff_rows):
    """coeff_rows: (n, 2) f32.  Returns layers(coeff_rows): (n, 1) f32."""
    n = coeff_rows.shape[0]
    return pl.pallas_call(
        _mlp_kernel,
        out_shape=jax.ShapeDtypeStruct((n, 1), jnp.float32),
        # Full-array blocks, single invocation: no grid, no pipeline overhead.
        in_specs=[pl.BlockSpec(memory_space=pltpu.MemorySpace.VMEM)],
        out_specs=pl.BlockSpec(memory_space=pltpu.MemorySpace.VMEM),
    )(coeff_rows.astype(jnp.float32))


# Jitted batched entry point (arbitrary n).
mlp_pallas = jax.jit(_pallas_mlp)


@jax.jit
def _forward_numeric(coefficients):
    """Whole numeric path of forward() as one dispatch: view(1,-1) + MLP."""
    coeff = jnp.reshape(coefficients, (1, -1)).astype(jnp.float32)  # .view(1, -1)
    return _pallas_mlp(coeff[:, :2])


class EquationNet:
    """JAX port of the PyTorch EquationNet."""

    def __init__(self):
        # _init_weights(): deterministic weights from the PyTorch module.
        # Kept as attributes for reference checks; the Pallas kernel bakes the
        # same values in as compile-time constants (no per-call weight DMA).
        self.w1 = jnp.array([[2.0, 3.0], [1.0, 1.0]], jnp.float32)  # Linear(2,2).weight
        self.b1 = jnp.zeros((2,), jnp.float32)                      # Linear(2,2).bias
        self.w2 = jnp.array([[1.0, -1.0]], jnp.float32)             # Linear(2,1).weight
        self.b2 = jnp.zeros((1,), jnp.float32)                      # Linear(2,1).bias

    def forward(self, coefficients):
        coefficients = jnp.asarray(coefficients)
        if coefficients.size < 2:
            raise ValueError("EquationNet.forward expects at least 2 coefficients")

        # self.layers is defined but unused in the PyTorch forward; we still run
        # it through the Pallas kernel so the module's numeric path runs on TPU.
        # Enqueued (async) BEFORE any host sync.
        mlp_out = _forward_numeric(coefficients)

        # Single small device->host transfer for the symbolic string; overlaps
        # the already-dispatched kernel.
        host = jax.device_get(coefficients).reshape(-1)
        a, b = float(host[0]), float(host[1])

        # TODO(synk): sympy symbolic expression / str() has no Pallas equivalent;
        # the equation string is formatted in plain Python (mirrors str(a*x + b*y)).
        sign = "-" if math.copysign(1.0, b) < 0.0 else "+"
        equation = f"{a}*x {sign} {abs(b)}*y"
        return equation, mlp_out


if __name__ == "__main__":
    key = jax.random.PRNGKey(0)
    coefficients = jax.random.normal(key, (2,), dtype=jnp.float32)

    net = EquationNet()
    equation, mlp_out = net.forward(coefficients)
    mlp_out = jax.block_until_ready(mlp_out)

    # Pure-JAX reference for the Sequential(Linear, ReLU, Linear) path.
    coeff = jnp.reshape(coefficients, (1, -1)).astype(jnp.float32)
    ref = jnp.maximum(coeff @ net.w1.T + net.b1, 0.0) @ net.w2.T + net.b2
    assert mlp_out.shape == (1, 1)
    assert jnp.allclose(mlp_out, ref, atol=1e-5), (mlp_out, ref)
    assert isinstance(equation, str) and "*x" in equation and "*y" in equation

    # Batched path: arbitrary n (no pad / slice); check n=8.
    batch = jax.random.normal(jax.random.PRNGKey(1), (8, 2), dtype=jnp.float32)
    out_b = jax.block_until_ready(mlp_pallas(batch))
    ref_b = jnp.maximum(batch @ net.w1.T + net.b1, 0.0) @ net.w2.T + net.b2
    assert out_b.shape == (8, 1)
    assert jnp.allclose(out_b, ref_b, atol=1e-5), (out_b, ref_b)

    print("KERNEL_OK")
</pallas_src>

<mosaic_0001>
module attributes {stable_mosaic.version = 11 : i64} {
  func.func @_mlp_kernel(%arg0: memref<1x2xf32, #tpu.memory_space<vmem>>, %arg1: memref<1x1xf32, #tpu.memory_space<vmem>>) attributes {dimension_semantics = [], scalar_prefetch = 0 : i64, scratch_operands = 0 : i64, tpu.core_type = #tpu.core_type<tc>} {
    %c0 = arith.constant 0 : index
    %c0_0 = arith.constant 0 : index
    %0 = vector.load %arg0[%c0, %c0_0] : memref<1x2xf32, #tpu.memory_space<vmem>>, vector<1x2xf32>
    %1 = vector.extract_strided_slice %0 {offsets = [0, 0], sizes = [1, 1], strides = [1, 1]} : vector<1x2xf32> to vector<1x1xf32>
    %2 = vector.extract_strided_slice %0 {offsets = [0, 1], sizes = [1, 1], strides = [1, 1]} : vector<1x2xf32> to vector<1x1xf32>
    %cst = arith.constant 2.000000e+00 : f32
    %3 = vector.broadcast %cst : f32 to vector<1x1xf32>
    %4 = arith.mulf %3, %1 : vector<1x1xf32>
    %cst_1 = arith.constant 3.000000e+00 : f32
    %5 = vector.broadcast %cst_1 : f32 to vector<1x1xf32>
    %6 = arith.mulf %5, %2 : vector<1x1xf32>
    %7 = arith.addf %4, %6 : vector<1x1xf32>
    %cst_2 = arith.constant 0.000000e+00 : f32
    %8 = vector.broadcast %cst_2 : f32 to vector<1x1xf32>
    %9 = arith.maximumf %7, %8 : vector<1x1xf32>
    %10 = arith.addf %1, %2 : vector<1x1xf32>
    %cst_3 = arith.constant 0.000000e+00 : f32
    %11 = vector.broadcast %cst_3 : f32 to vector<1x1xf32>
    %12 = arith.maximumf %10, %11 : vector<1x1xf32>
    %13 = arith.subf %9, %12 : vector<1x1xf32>
    %c0_4 = arith.constant 0 : index
    %c0_5 = arith.constant 0 : index
    %14 = vector.load %arg1[%c0_4, %c0_5] : memref<1x1xf32, #tpu.memory_space<vmem>>, vector<1x1xf32>
    tpu.vector_store %arg1[%c0_4, %c0_5], %13 {strides = array<i32>} : memref<1x1xf32, #tpu.memory_space<vmem>>, vector<1x1xf32>,
    return
  }
}

</mosaic_0001>

<bundles_post_ra>
// kernel: _forward_numeric.1
= control target key start
LH: loop header
LB: loop body
LE: loop exit
PB: predicated region body
PF: predicated region fallthrough
CT: control target
= control target key end

     0   :  { %6 = vsyncpa [#allocation3], 0  ;;  %s132_s0 = inlined_call_operand.hbm [shape: f32[1,2], index: 0, kind: input, shape index: {}]   ;;  %s133_s1 = inlined_call_operand.hbm [shape: f32[1,1], index: 1, kind: output, shape index: {}]  }
   0x1   :  { %7 = vsyncpa [#allocation4], 0  ;;  %s13_s8 = sshll.u32 %s132_s0, 4  ;;  %s113_s9 = smov [#allocation2]   ;;  %s14_s8 = int_to_ptr.hbm [resolvable:$true] %s13_s8 }
   0x2   :  { %s15_s10 = sshll.u32 %s113_s9, 4  ;;  %s16_s10 = int_to_ptr.vmem [resolvable:$true] %s15_s10 }
   0x3   :  { %18 = dma.hbm_to_vmem [thread:$0]  %s14_s8, 16, %s16_s10, [#allocation3]  }
   0x4   :  { %109 = dma.done.wait [#allocation3], 16  }
   0x5   :  { %110 = vsyncadd [#allocation3], 4294967280  ;;  %v23_v0 = vld [vmem:[#allocation2] sm:$0x1]  ;;  %s114_s11 = smov 127   ;;  %s115_s12 = smov [#allocation5]  }
   0x6   :  { %v25_v1 = vmul.f32 3.0, %v23_v0  ;;  %v24_v3 = vmul.f32 2.0, %v23_v0  ;;  %s46_s13 = sshll.u32 %s115_s12, 4  ;;  %s48_s15 = sshll.u32 %s133_s1, 4  ;;  %vm39_vm0 = vcmask 0   ;;  %s47_s13 = int_to_ptr.vmem [resolvable:$true] %s46_s13  ;;  %s49_s15 = int_to_ptr.hbm [resolvable:$true] %s48_s15 }
   0x8   :  { %27 = vrot.lane.b32.xlu0 %v25_v1, %s114_s11 }
  0x10   :  { %33 = vrot.lane.b32.xlu0 %v23_v0, %s114_s11 }
  0x7a   :  { %v28_v2 = vpop.permute.xlu0 %27 }
  0x7b   :  { %v30_v4 = vadd.f32 %v28_v2, %v24_v3 }
  0x7d   :  { %v31_v7 = vmax.f32 %v30_v4, 0.0 }
  0x82   :  { %v34_v5 = vpop.permute.xlu0 %33 }
  0x83   :  { %v36_v6 = vadd.f32 %v34_v5, %v23_v0 }
  0x85   :  { %v37_v8 = vmax.f32 %v36_v6, 0.0 }
  0x87   :  { %v38_v9 = vsub.f32 %v31_v7, %v37_v8 }
  0x89   :  { %40 = vst.msk [vmem:[#allocation5] sm:$0x1] %vm39_vm0, %v38_v9 }
  0x8a   :  { %51 = dma.vmem_to_hbm [thread:$0]  %s47_s13, 16, %s49_s15, [#allocation4]  }
  0x8b   :  { %111 = dma.done.wait [#allocation4], 16  }
  0x8c   :  { %112 = vsyncadd [#allocation4], 4294967280 }
  0x8d   :  { %56 = vsyncpa [#allocation3], 1 }
  0x8e   :  { %57 = vsyncpa [#allocation4], 1 }

</bundles_post_ra>
